<compile_context>
chip_gen: v6e
topology: v6e:2x2x1
jax: 0.10.0
libtpu: 0.0.40
codegen_flags: <defaults>
</compile_context>

<pallas_src>
from functools import partial

import jax
import jax.numpy as jnp
from jax.experimental import pallas as pl
from jax.experimental.pallas import tpu as pltpu


def _round_up(x, m):
    return ((x + m - 1) // m) * m


# ----------------------------------------------------------------------------
# Pallas kernels
# ----------------------------------------------------------------------------
def _conv_mm_kernel(w_ref, x_ref, b_ref, of_ref, ob_ref, *, negative_slope):
    # w_ref: (Cout, K) bf16 (VMEM-resident), x_ref: (K, TN) bf16, b_ref: (Cout, 1) f32
    # of_ref: (Cout, TN) f32 fmap, ob_ref: (Cout, TN) bf16 next-layer activation
    acc = jnp.dot(w_ref[...], x_ref[...], preferred_element_type=jnp.float32)
    acc = acc + b_ref[...]
    if negative_slope is not None:
        acc = jnp.where(acc >= 0, acc, acc * negative_slope)
    of_ref[...] = acc
    ob_ref[...] = acc.astype(jnp.bfloat16)


def _stft_mag_kernel(fr_ref, cs_ref, o_ref):
    # fr_ref: (TMf, n_fft) bf16, cs_ref: (2, n_fft, TF) bf16 (cos, sin), o_ref: (TMf, TF) bf16
    fr = fr_ref[...]
    cs = cs_ref[...]
    re = jnp.dot(fr, cs[0], preferred_element_type=jnp.float32)
    im = jnp.dot(fr, cs[1], preferred_element_type=jnp.float32)
    o_ref[...] = jnp.sqrt(re * re + im * im).astype(o_ref.dtype)


# ----------------------------------------------------------------------------
# Conv hot path: (Cout, K) @ (K, M) + bias (+ leaky_relu), tiled over M only
# ----------------------------------------------------------------------------
_VMEM_BUDGET = 30 * 1024 * 1024  # double-buffered working-set target (v7x-safe)


def _conv_need_bytes(tco, k, tn):
    # all blocks double-buffered by the auto-pipeline
    return 2 * (tco * k * 2 + k * tn * 2 + tco * 4 + tco * tn * 4 + tco * tn * 2)


def _matmul_bias_act(w_mat, patches_t, bias, negative_slope):
    Cout, K = w_mat.shape
    K2, M = patches_t.shape
    assert K == K2
    # Weight-resident: TCo = Cout (fits the budget for every layer of this model at TN>=128).
    TCo = Cout
    TN = 512
    while TN > 128 and _conv_need_bytes(TCo, K, TN) > _VMEM_BUDGET:
        TN //= 2
    Mp128 = _round_up(M, 128)
    if Mp128 <= TN:
        TN = Mp128
        if TN >= 256 and TN % 256 == 0:
            TN //= 2  # keep >=2 M tiles when possible (v7x dual-TensorCore sharding)
    Mp = _round_up(M, TN)
    xp = patches_t if Mp == M else jnp.pad(patches_t, ((0, 0), (0, Mp - M)))

    vmem_limit = max(32 * 1024 * 1024, _conv_need_bytes(TCo, K, TN) + 12 * 1024 * 1024)
    out_f32, out_bf16 = pl.pallas_call(
        partial(_conv_mm_kernel, negative_slope=negative_slope),
        out_shape=(
            jax.ShapeDtypeStruct((Cout, Mp), jnp.float32),
            jax.ShapeDtypeStruct((Cout, Mp), jnp.bfloat16),
        ),
        grid=(Mp // TN,),
        in_specs=[
            pl.BlockSpec((TCo, K), lambda mi: (0, 0)),   # constant index -> fetched once
            pl.BlockSpec((K, TN), lambda mi: (0, mi)),
            pl.BlockSpec((TCo, 1), lambda mi: (0, 0)),
        ],
        out_specs=(
            pl.BlockSpec((TCo, TN), lambda mi: (0, mi)),
            pl.BlockSpec((TCo, TN), lambda mi: (0, mi)),
        ),
        compiler_params=pltpu.CompilerParams(
            dimension_semantics=("parallel",),
            vmem_limit_bytes=vmem_limit,
        ),
    )(w_mat, xp, bias.reshape(Cout, 1))
    return out_f32[:, :M], out_bf16[:, :M]


def _wn_conv2d_cnhw(h, w_mat, bias, kernel, stride, padding, negative_slope):
    """Weight-norm-folded Conv2d on a CNHW bf16 activation.

    Returns (fmap_nchw f32 (N, Cout, Ho, Wo), next_act_cnhw bf16 (Cout, N, Ho, Wo)).
    """
    kh, kw = kernel
    sh, sw = stride
    ph, pw = padding
    Cin, N, H, W = h.shape
    Cout, K = w_mat.shape
    hp = jnp.pad(h, ((0, 0), (0, 0), (ph, ph), (pw, pw)))
    Ho = (H + 2 * ph - kh) // sh + 1
    Wo = (W + 2 * pw - kw) // sw + 1
    cols = []
    for i in range(kh):
        for j in range(kw):
            cols.append(hp[:, :, i : i + sh * Ho : sh, j : j + sw * Wo : sw])
    # K ordering: (kh, kw) outer, cin inner — matches the weight fold below.
    patches_t = jnp.stack(cols, axis=0).reshape(kh * kw * Cin, N * Ho * Wo)
    out_f32, out_bf16 = _matmul_bias_act(w_mat, patches_t, bias, negative_slope)
    fmap = jnp.transpose(out_f32.reshape(Cout, N, Ho, Wo), (1, 0, 2, 3))  # NCHW f32
    h_next = out_bf16.reshape(Cout, N, Ho, Wo)                            # CNHW bf16
    return fmap, h_next


def _fold_weight_norm(v, g, b):
    """weight_norm fold: w = g * v / ||v|| (norm over Cin,KH,KW) -> (Cout, KH*KW*Cin) bf16."""
    norm = jnp.sqrt(jnp.sum(v * v, axis=(1, 2, 3), keepdims=True))
    w = g * v / norm                                   # (Cout, Cin, KH, KW)
    Cout, Cin, KH, KW = v.shape
    w_mat = jnp.transpose(w, (0, 2, 3, 1)).reshape(Cout, KH * KW * Cin)
    return w_mat.astype(jnp.bfloat16), b.astype(jnp.float32)


# ----------------------------------------------------------------------------
# STFT magnitude (|torch.stft(x, n_fft, hop, center=True, window=None)|)
# ----------------------------------------------------------------------------
def _stft_magnitude(x, n_fft, hop, cs, F, Fp, TF):
    B, L = x.shape
    pad = n_fft // 2
    xp = jnp.pad(x, ((0, 0), (pad, pad)), mode="reflect")  # center=True, reflect pad
    n_frames = 1 + (xp.shape[1] - n_fft) // hop
    idx = jnp.arange(n_frames)[:, None] * hop + jnp.arange(n_fft)[None, :]
    frames = xp[:, idx].reshape(B * n_frames, n_fft).astype(jnp.bfloat16)

    Mf = B * n_frames
    TMf = min(256, _round_up(Mf, 8))
    Mfp = _round_up(Mf, TMf)
    if Mfp != Mf:
        frames = jnp.pad(frames, ((0, Mfp - Mf), (0, 0)))

    need = 2 * (TMf * n_fft * 2 + 2 * n_fft * TF * 2 + TMf * TF * 4)
    mag = pl.pallas_call(
        _stft_mag_kernel,
        out_shape=jax.ShapeDtypeStruct((Mfp, Fp), jnp.bfloat16),
        # freq OUTER / frames inner: cos/sin block index constant across the inner loop,
        # so the DFT matrix is DMA'd once and stays VMEM-resident.
        grid=(Fp // TF, Mfp // TMf),
        in_specs=[
            pl.BlockSpec((TMf, n_fft), lambda fj, mi: (mi, 0)),
            pl.BlockSpec((2, n_fft, TF), lambda fj, mi: (0, 0, fj)),
        ],
        out_specs=pl.BlockSpec((TMf, TF), lambda fj, mi: (mi, fj)),
        compiler_params=pltpu.CompilerParams(
            dimension_semantics=("arbitrary", "parallel"),
            vmem_limit_bytes=max(32 * 1024 * 1024, need + 8 * 1024 * 1024),
        ),
    )(frames, cs)
    mag = mag[:Mf, :F].reshape(B, n_frames, F)
    return jnp.transpose(mag, (0, 2, 1))  # (B, F, T) bf16


# ----------------------------------------------------------------------------
# Modules
# ----------------------------------------------------------------------------
def _init_layers(cfgs, key):
    layers = []
    for cin, cout, k, s, p in cfgs:
        key, k1, k2, k3 = jax.random.split(key, 4)
        v = 0.1 * jax.random.normal(k1, (cout, cin, k[0], k[1]), jnp.float32)
        g = 1.0 + 0.1 * jax.random.normal(k2, (cout, 1, 1, 1), jnp.float32)
        b = 0.1 * jax.random.normal(k3, (cout,), jnp.float32)
        w_mat, bias = _fold_weight_norm(v, g, b)
        layers.append((w_mat, bias, k, s, p))
    return layers


class DiscriminatorS:
    _CONV_CFG = [
        (1, 32, (3, 9), (1, 1), (1, 4)),
        (32, 32, (3, 9), (1, 2), (1, 4)),
        (32, 32, (3, 9), (1, 2), (1, 4)),
        (32, 32, (3, 9), (1, 2), (1, 4)),
        (32, 32, (3, 3), (1, 1), (1, 1)),
    ]
    _POST_CFG = (32, 1, (3, 3), (1, 1), (1, 1))

    def __init__(self, window_length, key):
        self.window_length = window_length
        self.layers = _init_layers(self._CONV_CFG + [self._POST_CFG], key)
        # Precompute the DFT matrices once: (2, n_fft, Fp) bf16, F padded to 256 lanes.
        n_fft = window_length
        F = n_fft // 2 + 1
        Fp = _round_up(F, 256)
        n = jnp.arange(n_fft, dtype=jnp.int32)[:, None]
        f = jnp.arange(Fp, dtype=jnp.int32)[None, :]
        # reduce the angle mod n_fft before cos/sin (keeps f32 trig accurate).
        phase = ((n * f) % n_fft).astype(jnp.float32) * (2.0 * jnp.pi / n_fft)
        self.cs = jnp.stack([jnp.cos(phase), jnp.sin(phase)], axis=0).astype(jnp.bfloat16)
        self.F, self.Fp = F, Fp
        # Largest frequency tile that fits the VMEM budget (whole Fp for all n_fft used here).
        budget = 30 * 1024 * 1024
        tmf = 256
        self.TF = 256
        for tf in [Fp] + ([512] if Fp % 512 == 0 else []) + [256]:
            if 2 * (tmf * n_fft * 2 + 2 * n_fft * tf * 2 + tmf * tf * 4) <= budget:
                self.TF = tf
                break

    def __call__(self, x):
        x = x.reshape(-1, x.shape[-1])
        spec = _stft_magnitude(
            x, self.window_length, self.window_length // 4,
            self.cs, self.F, self.Fp, self.TF)          # (B, F, T) bf16
        h = spec[None]                                   # CNHW bf16 with C=1
        fmap = []
        last = len(self.layers) - 1
        for li, (w_mat, bias, k, s, p) in enumerate(self.layers):
            slope = 0.1 if li < last else None
            f, h = _wn_conv2d_cnhw(h, w_mat, bias, k, s, p, slope)
            fmap.append(f)                               # NCHW f32
        return fmap


class DiscriminatorP:
    _CONV_CFG = [
        (1, 32, (5, 1), (3, 1), (2, 0)),
        (32, 128, (5, 1), (3, 1), (2, 0)),
        (128, 512, (5, 1), (3, 1), (2, 0)),
        (512, 1024, (5, 1), (3, 1), (2, 0)),
        (1024, 1024, (5, 1), (1, 1), (2, 0)),
    ]
    _POST_CFG = (1024, 1, (3, 1), (1, 1), (1, 0))

    def __init__(self, period, key):
        self.period = period
        self.layers = _init_layers(self._CONV_CFG + [self._POST_CFG], key)

    def __call__(self, x):
        # x: (B, C, T)
        t = x.shape[-1]
        pad = self.period - t % self.period      # matches reference F.pad(..., 'reflect')
        x = jnp.pad(x, ((0, 0), (0, 0), (0, pad)), mode="reflect")
        B, C, T = x.shape
        h = x.reshape(B, C, T // self.period, self.period)    # b c (l p) -> b c l p
        h = jnp.transpose(h, (1, 0, 2, 3)).astype(jnp.bfloat16)  # CNHW bf16
        fmap = []
        last = len(self.layers) - 1
        for li, (w_mat, bias, k, s, p) in enumerate(self.layers):
            slope = 0.1 if li < last else None
            f, h = _wn_conv2d_cnhw(h, w_mat, bias, k, s, p, slope)
            fmap.append(f)
        return fmap


class Discriminator:
    def __init__(self, periods=(2, 3, 5, 7, 11), fft_sizes=(2048, 1024, 512), *, key):
        discs = []
        for f in fft_sizes:
            key, sub = jax.random.split(key)
            discs.append(DiscriminatorS(f, key=sub))
        for p in periods:
            key, sub = jax.random.split(key)
            discs.append(DiscriminatorP(p, key=sub))
        self.discriminators = discs

    def __call__(self, y):
        peak = jnp.maximum(jnp.max(jnp.abs(y), axis=-1, keepdims=True), 1e-9)
        y = y / peak
        return [d(y) for d in self.discriminators]


if __name__ == "__main__":
    key = jax.random.PRNGKey(0)
    kx, kp = jax.random.split(key)
    # small audio input: (batch=2, channels=1, samples=256); small fft sizes / periods
    x = jax.random.normal(kx, (2, 1, 256), jnp.float32)
    disc = Discriminator(periods=[2, 3], fft_sizes=[128, 64], key=kp)
    fmaps = disc(x)
    fmaps = jax.block_until_ready(fmaps)

    assert len(fmaps) == 4 and all(len(f) == 6 for f in fmaps)
    # DiscriminatorS(128): spec (2, 65, 9)
    assert fmaps[0][0].shape == (2, 32, 65, 9)
    assert fmaps[0][-1].shape == (2, 1, 65, 2)
    # DiscriminatorS(64): spec (2, 33, 17)
    assert fmaps[1][0].shape == (2, 32, 33, 17)
    assert fmaps[1][-1].shape == (2, 1, 33, 3)
    # DiscriminatorP(2)
    assert fmaps[2][0].shape == (2, 32, 43, 2)
    assert fmaps[2][-1].shape == (2, 1, 2, 2)
    # DiscriminatorP(3)
    assert fmaps[3][0].shape == (2, 32, 29, 3)
    assert fmaps[3][-1].shape == (2, 1, 2, 3)
    assert all(f.dtype == jnp.float32 for fm in fmaps for f in fm)
    print("KERNEL_OK")
</pallas_src>

<mosaic_0001>
module attributes {stable_mosaic.version = 11 : i64} {
  func.func @_stft_mag_kernel(%arg0: i32, %arg1: i32, %arg2: memref<24x128xbf16, #tpu.memory_space<vmem>>, %arg3: memref<2x128x256xbf16, #tpu.memory_space<vmem>>, %arg4: memref<24x256xbf16, #tpu.memory_space<vmem>>) attributes {dimension_semantics = [#tpu.dimension_semantics<arbitrary>, #tpu.dimension_semantics<parallel>], iteration_bounds = array<i64: 1, 1>, scalar_prefetch = 0 : i64, scratch_operands = 0 : i64, tpu.core_type = #tpu.core_type<tc>, window_params = [{transform_indices = @transform_0, window_bounds = array<i64: 24, 128>}, {transform_indices = @transform_1, window_bounds = array<i64: 2, 128, 256>}, {transform_indices = @transform_2, window_bounds = array<i64: 24, 256>}]} {
    %c0 = arith.constant 0 : index
    %c0_0 = arith.constant 0 : index
    %0 = vector.load %arg2[%c0, %c0_0] : memref<24x128xbf16, #tpu.memory_space<vmem>>, vector<24x128xbf16>
    %c0_1 = arith.constant 0 : index
    %c0_2 = arith.constant 0 : index
    %c0_3 = arith.constant 0 : index
    %1 = vector.load %arg3[%c0_1, %c0_2, %c0_3] : memref<2x128x256xbf16, #tpu.memory_space<vmem>>, vector<2x128x256xbf16>
    %2 = vector.extract_strided_slice %1 {offsets = [0, 0, 0], sizes = [1, 128, 256], strides = [1, 1, 1]} : vector<2x128x256xbf16> to vector<1x128x256xbf16>
    %3 = vector.shape_cast %2 : vector<1x128x256xbf16> to vector<128x256xbf16>
    %cst = arith.constant dense<0.000000e+00> : vector<24x256xf32>
    %4 = tpu.matmul %0, %3, %cst {dimension_numbers = #tpu.dot_dimension_numbers<[1], [0], [0], [1], [0, 0, 1, 1], [], []>} : vector<24x128xbf16>, vector<128x256xbf16>, vector<24x256xf32> -> vector<24x256xf32>
    %5 = vector.extract_strided_slice %1 {offsets = [1, 0, 0], sizes = [1, 128, 256], strides = [1, 1, 1]} : vector<2x128x256xbf16> to vector<1x128x256xbf16>
    %6 = vector.shape_cast %5 : vector<1x128x256xbf16> to vector<128x256xbf16>
    %cst_4 = arith.constant dense<0.000000e+00> : vector<24x256xf32>
    %7 = tpu.matmul %0, %6, %cst_4 {dimension_numbers = #tpu.dot_dimension_numbers<[1], [0], [0], [1], [0, 0, 1, 1], [], []>} : vector<24x128xbf16>, vector<128x256xbf16>, vector<24x256xf32> -> vector<24x256xf32>
    %8 = arith.mulf %4, %4 : vector<24x256xf32>
    %9 = arith.mulf %7, %7 : vector<24x256xf32>
    %10 = arith.addf %8, %9 : vector<24x256xf32>
    %11 = math.sqrt %10 : vector<24x256xf32>
    %12 = arith.truncf %11 : vector<24x256xf32> to vector<24x256xbf16>
    %c0_5 = arith.constant 0 : index
    %c0_6 = arith.constant 0 : index
    %13 = vector.load %arg4[%c0_5, %c0_6] : memref<24x256xbf16, #tpu.memory_space<vmem>>, vector<24x256xbf16>
    tpu.vector_store %arg4[%c0_5, %c0_6], %12 {strides = array<i32>} : memref<24x256xbf16, #tpu.memory_space<vmem>>, vector<24x256xbf16>,
    return
  }
  func.func @transform_0(%arg0: i32, %arg1: i32) -> (i32, i32) {
    %c0_i32 = arith.constant 0 : i32
    %c0_i32_0 = arith.constant 0 : i32
    return %arg1, %c0_i32 : i32, i32
  }
  func.func @transform_1(%arg0: i32, %arg1: i32) -> (i32, i32, i32) {
    %c0_i32 = arith.constant 0 : i32
    %c0_i32_0 = arith.constant 0 : i32
    %c0_i32_1 = arith.constant 0 : i32
    return %c0_i32, %c0_i32_0, %arg0 : i32, i32, i32
  }
  func.func @transform_2(%arg0: i32, %arg1: i32) -> (i32, i32) {
    %c0_i32 = arith.constant 0 : i32
    return %arg1, %arg0 : i32, i32
  }
}

</mosaic_0001>

<bundles_post_ra>
// kernel: tpu_custom_call.1
= control target key start
LH: loop header
LB: loop body
LE: loop exit
PB: predicated region body
PF: predicated region fallthrough
CT: control target
= control target key end

     0   :  { %7 = vsyncpa [#allocation3], 0  ;;  %s667_s0 = inlined_call_operand.hbm [shape: bf16[24,128], index: 0, kind: input, shape index: {}]   ;;  %s668_s1 = inlined_call_operand.hbm [shape: bf16[2,128,256], index: 1, kind: input, shape index: {}]   ;;  %s669_s2 = inlined_call_operand.hbm [shape: bf16[24,256], index: 2, kind: output, shape index: {}]  }
   0x1   :  { %8 = vsyncpa [#allocation6], 0 }
   0x2   :  { %9 = vsyncpa [#allocation4], 0  ;;  %s625_s9 = smov [#allocation2]  }
   0x3   :  { %s15_s10 = sshll.u32 %s625_s9, 4  ;;  %s16_s10 = int_to_ptr.vmem [resolvable:$true] %s15_s10 }
   0x4   :  { %s567_s11 = scalar_lea.vmem %s16_s10, 192  ;;  %p572_p1 = scmp.lt.s32.totalorder %s16_s10, %s16_s10 }
   0x5   :  { %p568_p0 = scmp.ne.s32.totalorder %s16_s10, %s567_s11  ;;  %p573_p2 = scmp.lt.s32.totalorder %s567_s11, %s567_s11 }
   0x7   :  { %p574_p3 = por %p573_p2, %p572_p1 }
   0x9   :  { %p575_p4 = pnand %p574_p3, %p568_p0 }
   0xb   :  { %578 = shalt.err (!%p575_p4)
}
   0xc   :  { %s626_s12 = smov 64   ;;  %s627_s13 = smov 4  }
   0xd   :  { %21 = dma.hbm_to_vmem [thread:$0]  %s667_s0, 192, %s16_s10, [#allocation3], %s626_s12, %s626_s12, %s627_s13  }
   0xe   :  { %s628_s16 = smov [#allocation5]  }
   0xf   :  { %s27_s17 = sshll.u32 %s628_s16, 4  ;;  %s28_s17 = int_to_ptr.vmem [resolvable:$true] %s27_s17 }
  0x10   :  { %s587_s18 = scalar_lea.vmem %s28_s17, 4096  ;;  %p592_p6 = scmp.lt.s32.totalorder %s28_s17, %s28_s17 }
  0x11   :  { %p588_p5 = scmp.ne.s32.totalorder %s28_s17, %s587_s18  ;;  %p593_p7 = scmp.lt.s32.totalorder %s587_s18, %s587_s18 }
  0x13   :  { %p594_p8 = por %p593_p7, %p592_p6 }
  0x15   :  { %p595_p9 = pnand %p594_p8, %p588_p5 }
  0x17   :  { %598 = shalt.err (!%p595_p9)
}
  0x18   :  { %s629_s19 = smov 128   ;;  %s630_s20 = smov 8  }
  0x19   :  { %33 = dma.hbm_to_vmem [thread:$0]  %s668_s1, 4096, %s28_s17, [#allocation6], %s629_s19, %s629_s19, %s630_s20  }
  0x1a   :  { %619 = dma.done.wait [#allocation3], 192  }
  0x1b   :  { %620 = vsyncadd [#allocation3], 4294967104 }
  0x1c   :  { %621 = dma.done.wait [#allocation6], 4096  }
  0x1d   :  { %622 = vsyncadd [#allocation6], 4294963200  ;;  %v631_v0 = vmov 0   ;;  %v497_v1 = vld [vmem:[#allocation5 + $0x74] ss:$8 sps:$4 sm:$0xff]   ;;  %s632_s0 = smov [#allocation7]  }
  0x1e   :  { %198 = vmatprep.mubr.bf16.mxu0 %v631_v0  ;;  %329 = vmatprep.mubr.bf16.mxu1 %v631_v0  ;;  %v499_v2 = vld [vmem:[#allocation5 + $0xf4] ss:$8 sps:$4 sm:$0xff]   ;;  %v501_v3 = vld [vmem:[#allocation5 + $0x70] ss:$8 sps:$4 sm:$0xff]   ;;  %v503_v5 = vld [vmem:[#allocation5 + $0x64] ss:$8 sps:$4 sm:$0xff]  }
  0x1f   :  { %166 = vmatprep.subr.bf16.mxu0 %v497_v1  ;;  %v502_v4 = vld [vmem:[#allocation5 + $0xf0] ss:$8 sps:$4 sm:$0xff]   ;;  %297 = vmatprep.subr.bf16.mxu1 %v499_v2  ;;  %v505_v6 = vld [vmem:[#allocation5 + $0xe4] ss:$8 sps:$4 sm:$0xff]   ;;  %v507_v7 = vld [vmem:[#allocation5 + $0x60] ss:$8 sps:$4 sm:$0xff]  }
  0x20   :  { %167 = vmatpush1.bf16.msra.mxu0 %v501_v3  ;;  %298 = vmatpush1.bf16.msra.mxu1 %v502_v4  ;;  %v508_v8 = vld [vmem:[#allocation5 + $0xe0] ss:$8 sps:$4 sm:$0xff]   ;;  %v509_v9 = vld [vmem:[#allocation5 + $0x54] ss:$8 sps:$4 sm:$0xff]   ;;  %v513_v11 = vld [vmem:[#allocation5 + $0x50] ss:$8 sps:$4 sm:$0xff]  }
  0x21   :  { %168 = vmatprep.subr.bf16.mxu0 %v503_v5  ;;  %299 = vmatprep.subr.bf16.mxu1 %v505_v6  ;;  %v511_v10 = vld [vmem:[#allocation5 + $0xd4] ss:$8 sps:$4 sm:$0xff]   ;;  %v514_v12 = vld [vmem:[#allocation5 + $0xd0] ss:$8 sps:$4 sm:$0xff]   ;;  %v515_v13 = vld [vmem:[#allocation5 + $0x44] ss:$8 sps:$4 sm:$0xff]  }
  0x22   :  { %v517_v14 = vld [vmem:[#allocation5 + $0xc4] ss:$8 sps:$4 sm:$0xff]   ;;  %v519_v15 = vld [vmem:[#allocation5 + $0x40] ss:$8 sps:$4 sm:$0xff]   ;;  %v521_v17 = vld [vmem:[#allocation5 + $0x34] ss:$8 sps:$4 sm:$0xff]  }
  0x23   :  { %v520_v16 = vld [vmem:[#allocation5 + $0xc0] ss:$8 sps:$4 sm:$0xff]   ;;  %v523_v18 = vld [vmem:[#allocation5 + $0xb4] ss:$8 sps:$4 sm:$0xff]   ;;  %v525_v19 = vld [vmem:[#allocation5 + $0x30] ss:$8 sps:$4 sm:$0xff]  }
  0x24   :  { %169 = vmatpush1.bf16.msra.mxu0 %v507_v7  ;;  %300 = vmatpush1.bf16.msra.mxu1 %v508_v8  ;;  %v526_v20 = vld [vmem:[#allocation5 + $0xb0] ss:$8 sps:$4 sm:$0xff]   ;;  %v527_v21 = vld [vmem:[#allocation5 + $0x24] ss:$8 sps:$4 sm:$0xff]   ;;  %v531_v23 = vld [vmem:[#allocation5 + $0x20] ss:$8 sps:$4 sm:$0xff]  }
  0x25   :  { %170 = vmatprep.subr.bf16.mxu0 %v509_v9  ;;  %301 = vmatprep.subr.bf16.mxu1 %v511_v10  ;;  %v529_v22 = vld [vmem:[#allocation5 + $0xa4] ss:$8 sps:$4 sm:$0xff]   ;;  %v532_v24 = vld [vmem:[#allocation5 + $0xa0] ss:$8 sps:$4 sm:$0xff]   ;;  %v533_v25 = vld [vmem:[#allocation5 + $0x14] ss:$8 sps:$4 sm:$0xff]  }
  0x26   :  { %v535_v26 = vld [vmem:[#allocation5 + $0x94] ss:$8 sps:$4 sm:$0xff]   ;;  %v537_v27 = vld [vmem:[#allocation5 + $0x10] ss:$8 sps:$4 sm:$0xff]   ;;  %v539_v29 = vld [vmem:[#allocation5 + $0x4] ss:$8 sps:$4 sm:$0xff]  }
  0x27   :  { %v538_v28 = vld [vmem:[#allocation5 + $0x90] ss:$8 sps:$4 sm:$0xff]   ;;  %v541_v30 = vld [vmem:[#allocation5 + $0x84] ss:$8 sps:$4 sm:$0xff]   ;;  %v543_v31 = vld [vmem:[#allocation5] ss:$8 sps:$4 sm:$0xff]  }
  0x28   :  { %171 = vmatpush1.bf16.msra.mxu0 %v513_v11  ;;  %302 = vmatpush1.bf16.msra.mxu1 %v514_v12  ;;  %v544_v32 = vld [vmem:[#allocation5 + $0x80] ss:$8 sps:$4 sm:$0xff]   ;;  %v545_v33 = vld [vmem:[#allocation2] sm:$0xff]   ;;  %v546_v34 = vld [vmem:[#allocation2 + $0x8] ss:$0 sps:$4 sm:$0xff]   ;;  %s436_s1 = sshll.u32 %s632_s0, 4  ;;  %s437_s1 = int_to_ptr.vmem [resolvable:$true] %s436_s1 }
  0x29   :  { %172 = vmatprep.subr.bf16.mxu0 %v515_v13  ;;  %303 = vmatprep.subr.bf16.mxu1 %v517_v14  ;;  %s599_s23 = scalar_lea.vmem %s437_s1, 384  ;;  %p604_p11 = scmp.lt.s32.totalorder %s437_s1, %s437_s1 }
  0x2a   :  { %p600_p10 = scmp.ne.s32.totalorder %s437_s1, %s599_s23  ;;  %p605_p12 = scmp.lt.s32.totalorder %s599_s23, %s599_s23 }
  0x2c   :  { %173 = vmatpush1.bf16.msra.mxu0 %v519_v15  ;;  %304 = vmatpush1.bf16.msra.mxu1 %v520_v16  ;;  %p606_p13 = por %p605_p12, %p604_p11 }
  0x2d   :  { %174 = vmatprep.subr.bf16.mxu0 %v521_v17  ;;  %305 = vmatprep.subr.bf16.mxu1 %v523_v18 }
  0x2e   :  { %p607_p0 = pnand %p606_p13, %p600_p10 }
  0x30   :  { %175 = vmatpush1.bf16.msra.mxu0 %v525_v19  ;;  %306 = vmatpush1.bf16.msra.mxu1 %v526_v20 }
  0x31   :  { %176 = vmatprep.subr.bf16.mxu0 %v527_v21  ;;  %307 = vmatprep.subr.bf16.mxu1 %v529_v22 }
  0x34   :  { %177 = vmatpush1.bf16.msra.mxu0 %v531_v23  ;;  %308 = vmatpush1.bf16.msra.mxu1 %v532_v24 }
  0x35   :  { %178 = vmatprep.subr.bf16.mxu0 %v533_v25  ;;  %309 = vmatprep.subr.bf16.mxu1 %v535_v26 }
  0x38   :  { %179 = vmatpush1.bf16.msra.mxu0 %v537_v27  ;;  %310 = vmatpush1.bf16.msra.mxu1 %v538_v28 }
  0x39   :  { %180 = vmatprep.subr.bf16.mxu0 %v539_v29  ;;  %311 = vmatprep.subr.bf16.mxu1 %v541_v30 }
  0x3c   :  { %181 = vmatpush1.bf16.msra.mxu0 %v543_v31  ;;  %312 = vmatpush1.bf16.msra.mxu1 %v544_v32 }
  0x3f   :  { %199 = vmatmul.mubr.bf16.vlgmr.msra.gmra.mxu0 %v545_v33  ;;  %330 = vmatmul.mubr.bf16.vlgmr.msra.gmra.mxu1 %v545_v33 }
  0x40   :  { %208 = vmatprep.mubr.bf16.mxu0 %v631_v0  ;;  %339 = vmatprep.mubr.bf16.mxu1 %v631_v0 }
  0x47   :  { %209 = vmatmul.mubr.bf16.gmra.mxu0 %v546_v34  ;;  %340 = vmatmul.mubr.bf16.gmra.mxu1 %v546_v34 }
  0xff   :  { %v200_v35 = vpop.f32.mrf.mxu0  ;;  %v331_v36 = vpop.f32.mrf.mxu1 }
 0x100   :  { %v348_v37 = vmul.f32 %v200_v35, %v200_v35  ;;  %v354_v38 = vmul.f32 %v331_v36, %v331_v36 }
 0x101   :  { %v202_v39 = vpop.f32.mrf.mxu0  ;;  %v333_v40 = vpop.f32.mrf.mxu1 }
 0x102   :  { %v360_v41 = vadd.f32 %v354_v38, %v348_v37  ;;  %v349_v42 = vmul.f32 %v202_v39, %v202_v39  ;;  %v355_v43 = vmul.f32 %v333_v40, %v333_v40 }
 0x103   :  { %v204_v44 = vpop.f32.mrf.mxu0  ;;  %v335_v45 = vpop.f32.mrf.mxu1 }
 0x104   :  { %547 = vrsqrt.f32 %v360_v41  ;;  %v361_v46 = vadd.f32 %v355_v43, %v349_v42  ;;  %v350_v47 = vmul.f32 %v204_v44, %v204_v44  ;;  %v356_v48 = vmul.f32 %v335_v45, %v335_v45 }
 0x105   :  { %v206_v49 = vpop.f32.mrf.mxu0  ;;  %v337_v50 = vpop.f32.mrf.mxu1  ;;  %vm368_vm0 = vcmp.eq.f32.partialorder %v360_v41, inf  ;;  %v371_v11 = vand.u32 2147483648, %v360_v41  ;;  %vm370_vm2 = vcmp.eq.f32.partialorder %v360_v41, 0.0 }
 0x106   :  { %549 = vrsqrt.f32 %v361_v46  ;;  %v362_v51 = vadd.f32 %v356_v48, %v350_v47  ;;  %v351_v52 = vmul.f32 %v206_v49, %v206_v49  ;;  %v357_v53 = vmul.f32 %v337_v50, %v337_v50 }
 0x107   :  { %v210_v54 = vpop.f32.mrf.mxu0  ;;  %v341_v55 = vpop.f32.mrf.mxu1  ;;  %vm375_vm1 = vcmp.eq.f32.partialorder %v361_v46, inf  ;;  %v378_v12 = vand.u32 2147483648, %v361_v46  ;;  %vm377_vm3 = vcmp.eq.f32.partialorder %v361_v46, 0.0 }
 0x108   :  { %551 = vrsqrt.f32 %v362_v51  ;;  %v363_v56 = vadd.f32 %v357_v53, %v351_v52  ;;  %v352_v57 = vmul.f32 %v210_v54, %v210_v54  ;;  %v358_v58 = vmul.f32 %v341_v55, %v341_v55 }
 0x109   :  { %v212_v59 = vpop.f32.mrf.mxu0  ;;  %v343_v60 = vpop.f32.mrf.mxu1  ;;  %vm382_vm4 = vcmp.eq.f32.partialorder %v362_v51, inf  ;;  %v385_v22 = vand.u32 2147483648, %v362_v51  ;;  %vm384_vm6 = vcmp.eq.f32.partialorder %v362_v51, 0.0 }
 0x10a   :  { %553 = vrsqrt.f32 %v363_v56  ;;  %v364_v61 = vadd.f32 %v358_v58, %v352_v57  ;;  %v353_v62 = vmul.f32 %v212_v59, %v212_v59  ;;  %v359_v63 = vmul.f32 %v343_v60, %v343_v60 }
 0x10b   :  { %v214_v0 = vpop.f32.mrf.mxu0  ;;  %v345_v1 = vpop.f32.mrf.mxu1  ;;  %vm389_vm5 = vcmp.eq.f32.partialorder %v363_v56, inf  ;;  %v392_v23 = vand.u32 2147483648, %v363_v56  ;;  %vm391_vm7 = vcmp.eq.f32.partialorder %v363_v56, 0.0 }
 0x10c   :  { %555 = vrsqrt.f32 %v364_v61  ;;  %v365_v2 = vadd.f32 %v359_v63, %v353_v62  ;;  %vm396_vm8 = vcmp.eq.f32.partialorder %v364_v61, inf  ;;  %v399_v32 = vand.u32 2147483648, %v364_v61 }
 0x10d   :  { %v215_v3 = vpop.f32.mrf.mxu0  ;;  %v346_v4 = vpop.f32.mrf.mxu1  ;;  %vm398_vm10 = vcmp.eq.f32.partialorder %v364_v61, 0.0 }
 0x10e   :  { %557 = vrsqrt.f32 %v365_v2  ;;  %vm403_vm9 = vcmp.eq.f32.partialorder %v365_v2, inf  ;;  %v406_v33 = vand.u32 2147483648, %v365_v2  ;;  %vm405_vm11 = vcmp.eq.f32.partialorder %v365_v2, 0.0 }
 0x111   :  { %v548_v5 = vpop.eup %547 }
 0x112   :  { %v367_v6 = vmul.f32 %v548_v5, %v360_v41 }
 0x113   :  { %v550_v7 = vpop.eup %549 }
 0x114   :  { %v369_v8 = vsel %vm368_vm0, %v360_v41, %v367_v6  ;;  %v374_v9 = vmul.f32 %v550_v7, %v361_v46 }
 0x115   :  { %v552_v10 = vpop.eup %551  ;;  %v372_v16 = vsel %vm370_vm2, %v371_v11, %v369_v8 }
 0x116   :  { %v376_v13 = vsel %vm375_vm1, %v361_v46, %v374_v9  ;;  %v381_v14 = vmul.f32 %v552_v10, %v362_v51 }
 0x117   :  { %v554_v15 = vpop.eup %553  ;;  %v379_v17 = vsel %vm377_vm3, %v378_v12, %v376_v13 }
 0x118   :  { %v383_v18 = vsel %vm382_vm4, %v362_v51, %v381_v14  ;;  %v388_v19 = vmul.f32 %v554_v15, %v363_v56  ;;  %v486_v20 = vpack.c.bf16 %v379_v17, %v372_v16 }
 0x119   :  { %v556_v21 = vpop.eup %555  ;;  %v386_v27 = vsel %vm384_vm6, %v385_v22, %v383_v18 }
 0x11a   :  { %v390_v24 = vsel %vm389_vm5, %v363_v56, %v388_v19  ;;  %v395_v25 = vmul.f32 %v556_v21, %v364_v61  ;;  %428 = vst [vmem:[#allocation7] sm:$0xff] %v486_v20 }
 0x11b   :  { %v558_v26 = vpop.eup %557  ;;  %v393_v28 = vsel %vm391_vm7, %v392_v23, %v390_v24 }
 0x11c   :  { %v397_v29 = vsel %vm396_vm8, %v364_v61, %v395_v25  ;;  %v402_v30 = vmul.f32 %v558_v26, %v365_v2  ;;  %v487_v31 = vpack.c.bf16 %v393_v28, %v386_v27 }
 0x11d   :  { %v400_v35 = vsel %vm398_vm10, %v399_v32, %v397_v29 }
 0x11e   :  { %v404_v34 = vsel %vm403_vm9, %v365_v2, %v402_v30  ;;  %429 = vst [vmem:[#allocation7 + $0x8] sm:$0xff] %v487_v31 }
 0x11f   :  { %v407_v36 = vsel %vm405_vm11, %v406_v33, %v404_v34 }
 0x120   :  { %v488_v37 = vpack.c.bf16 %v407_v36, %v400_v35 }
 0x122   :  { %430 = vst [vmem:[#allocation7 + $0x10] sm:$0xff] %v488_v37 }
 0x123   :  { %610 = shalt.err (!%p607_p0)
}
 0x124   :  { %442 = dma.vmem_to_hbm [thread:$0]  %s437_s1, 384, %s669_s2, [#allocation4], %s629_s19, %s629_s19, %s630_s20  }
 0x125   :  { %623 = dma.done.wait [#allocation4], 384  }
 0x126   :  { %624 = vsyncadd [#allocation4], 4294966912 }
 0x127   :  { %446 = vsyncpa [#allocation3], 1 }
 0x128   :  { %447 = vsyncpa [#allocation6], 1 }
 0x129   :  { %448 = vsyncpa [#allocation4], 1 }

</bundles_post_ra>
